<compile_context>
chip_gen: v6e
topology: v6e:2x2x1
jax: 0.10.0
libtpu: 0.0.40
codegen_flags: <defaults>
</compile_context>

<pallas_src>
import functools

import jax
import jax.numpy as jnp
from jax.experimental import pallas as pl
from jax.experimental.pallas import tpu as pltpu

BASE_LOSS_DICT = {"ce_loss": 0}


def _round_up(x, m):
    return (x + m - 1) // m * m


# ---------------------------------------------------------------------------
# Fused kernel: normalize + conv3x3(SAME) + bias + ReLU + global-avg-pool + FC
# ---------------------------------------------------------------------------
def _fused_backbone_kernel(x_ref, m_ref, ns_ref, nsh_ref, cw_ref, cb_ref,
                           fw_ref, fb_ref, o_ref, *, Wp, L, G, inv_hw):
    """One grid step == one image.

    x_ref : (1, C, LE) f32  raw pixels, W-padded, flattened, zero guard bands
    m_ref : (1, LE)    f32  1.0 at real pixels, 0.0 at padding/guard positions
    ns/nsh: (C, 1)     f32  per-channel 1/(div*std) and -mean/std
    cw    : (9, hidden, C) bf16  conv weight, tap-major
    cb    : (hidden, 1) f32, fw: (hidden, NCpad) f32, fb: (1, NCpad) f32
    """
    x = x_ref[0]                                    # (C, LE) f32
    m = m_ref[...]                                  # (1, LE)

    # Normalize on the VPU; mask -> exact zeros at SAME-padding in *normalized*
    # space (matches the original normalize -> zero-padded conv semantics).
    xn = (x * ns_ref[...] + nsh_ref[...]) * m       # (C, LE) f32
    xnb = xn.astype(jnp.bfloat16)                   # bf16 MXU feed

    # In-kernel im2col: tap (dy, dx) is the slab shifted by (dy-1)*Wp + (dx-1),
    # i.e. a static lane-offset slice.  Contract channels tap-by-tap on the MXU
    # (9 tiny matmuls, f32 accumulate); spatial stays on the lane axis.
    conv = None
    tap = 0
    for dy in range(3):
        for dx in range(3):
            s = G + (dy - 1) * Wp + (dx - 1)
            part = jnp.dot(cw_ref[tap], xnb[:, s:s + L],
                           preferred_element_type=jnp.float32)  # (hidden, L)
            conv = part if conv is None else conv + part
            tap += 1

    act = jnp.maximum(conv + cb_ref[...], 0.0)      # bias + ReLU, (hidden, L)

    # Global average pool: masked lane-sum (padding columns contribute 0).
    pooled = jnp.sum(act * m[:, G:G + L], axis=-1, keepdims=True) * inv_hw

    # FC head as a sublane reduction (hidden is tiny; no transpose needed).
    logits = jnp.sum(pooled * fw_ref[...], axis=0, keepdims=True) + fb_ref[...]
    o_ref[...] = logits.reshape(o_ref.shape)        # (1, 1, NCpad), lane-dense


def backbone_forward(img, params, normalize_cfg):
    """normalize + conv3x3(pad=1) + ReLU + global-avg-pool + FC, fused on TPU."""
    N, C, H, W = img.shape
    hidden = params["conv_w"].shape[0]
    num_classes = params["fc_w"].shape[1]

    Wp = W + 2                      # SAME padding in W
    L = H * Wp                      # flattened (row-padded-only) spatial extent
    G = Wp + 1                      # zero guard band == top/bottom SAME padding
    LE = L + 2 * G

    div = float(normalize_cfg["div_value"])
    mean = jnp.asarray(normalize_cfg["mean"], jnp.float32).reshape(C, 1)
    std = jnp.asarray(normalize_cfg["std"], jnp.float32).reshape(C, 1)
    nscale = 1.0 / (div * std)                                   # (C, 1)
    nshift = -mean / std                                         # (C, 1)

    # Cheap XLA-side prep (single pad pass over the image, no 9x im2col):
    xw = jnp.pad(img.astype(jnp.float32), ((0, 0), (0, 0), (0, 0), (1, 1)))
    xe = jnp.pad(xw.reshape(N, C, L), ((0, 0), (0, 0), (G, G)))  # (N, C, LE)

    # Interior mask: 1.0 at real pixels, 0.0 at padding / guard positions.
    col = jnp.arange(Wp, dtype=jnp.int32)
    row_valid = ((col >= 1) & (col <= W)).astype(jnp.float32)    # (Wp,)
    mask = jnp.pad(jnp.tile(row_valid, H), (G, G)).reshape(1, LE)

    # Conv weight, tap-major: cw[tap, o, c] = conv_w[o, c, dy, dx].
    cw = params["conv_w"].transpose(2, 3, 0, 1).reshape(9, hidden, C)
    cw = cw.astype(jnp.bfloat16)
    cb = params["conv_b"].reshape(hidden, 1).astype(jnp.float32)

    nc_pad = _round_up(num_classes, 128)            # lane-dense logits
    fw = jnp.zeros((hidden, nc_pad), jnp.float32).at[:, :num_classes].set(
        params["fc_w"].astype(jnp.float32))
    fb = jnp.zeros((1, nc_pad), jnp.float32).at[:, :num_classes].set(
        params["fc_b"].astype(jnp.float32))

    kernel = functools.partial(_fused_backbone_kernel, Wp=Wp, L=L, G=G,
                               inv_hw=1.0 / float(H * W))

    flops = int(2 * N * H * W * hidden * (9 * C) + 2 * N * hidden * nc_pad)
    bytes_accessed = int(xe.size * 4 + mask.size * 4 + cw.size * 2 +
                         (cb.size + fw.size + fb.size + N * nc_pad) * 4)

    out = pl.pallas_call(
        kernel,
        out_shape=jax.ShapeDtypeStruct((N, 1, nc_pad), jnp.float32),
        grid=(N,),
        in_specs=[
            pl.BlockSpec((1, C, LE), lambda n: (n, 0, 0)),       # image slab
            pl.BlockSpec((1, LE), lambda n: (0, 0)),             # interior mask
            pl.BlockSpec((C, 1), lambda n: (0, 0)),              # 1/(div*std)
            pl.BlockSpec((C, 1), lambda n: (0, 0)),              # -mean/std
            pl.BlockSpec((9, hidden, C), lambda n: (0, 0, 0)),   # conv weight
            pl.BlockSpec((hidden, 1), lambda n: (0, 0)),         # conv bias
            pl.BlockSpec((hidden, nc_pad), lambda n: (0, 0)),    # fc weight
            pl.BlockSpec((1, nc_pad), lambda n: (0, 0)),         # fc bias
        ],
        out_specs=pl.BlockSpec((1, 1, nc_pad), lambda n: (n, 0, 0)),
        compiler_params=pltpu.CompilerParams(
            dimension_semantics=("parallel",),
            vmem_limit_bytes=32 * 1024 * 1024),
        cost_estimate=pl.CostEstimate(flops=flops, transcendentals=0,
                                      bytes_accessed=bytes_accessed),
    )(xe, mask, nscale, nshift, cw, cb, fw, fb)
    return out[:, 0, :num_classes]


# ---------------------------------------------------------------------------
# BaseModel equivalent
# ---------------------------------------------------------------------------
def init_params(key, in_ch=3, hidden=32, num_classes=10):
    k1, k2, k3 = jax.random.split(key, 3)
    return dict(
        conv_w=0.1 * jax.random.normal(k1, (hidden, in_ch, 3, 3), jnp.float32),
        conv_b=0.01 * jax.random.normal(k2, (hidden,), jnp.float32),
        fc_w=0.1 * jax.random.normal(k3, (hidden, num_classes), jnp.float32),
        fc_b=jnp.zeros((num_classes,), jnp.float32),
    )


def base_model_forward(data_dict, params, normalize_cfg, valid_loss_dict):
    out_dict, label_dict, loss_dict = {}, {}, {}
    out = backbone_forward(data_dict["img"], params, normalize_cfg)
    out_dict["out"] = out
    label_dict["out"] = data_dict["label"][:, 0]
    if "ce_loss" in valid_loss_dict:
        # TODO(synk): original wraps loss metadata in torch.cuda.LongTensor/FloatTensor;
        # the actual CE loss is computed outside forward(), so only metadata is built here.
        loss_dict["ce_loss"] = dict(
            params=[out, data_dict["label"][:, 0]],
            type=jnp.asarray([BASE_LOSS_DICT["ce_loss"]], dtype=jnp.int32),
            weight=jnp.asarray([valid_loss_dict["ce_loss"]], dtype=jnp.float32),
        )
    return out_dict, label_dict, loss_dict


# ---------------------------------------------------------------------------
# Pure-JAX reference for sanity checking
# ---------------------------------------------------------------------------
def _reference(img, params, normalize_cfg, operand_dtype=jnp.float32):
    div = float(normalize_cfg["div_value"])
    mean = jnp.asarray(normalize_cfg["mean"], jnp.float32).reshape(1, -1, 1, 1)
    std = jnp.asarray(normalize_cfg["std"], jnp.float32).reshape(1, -1, 1, 1)
    if operand_dtype == jnp.float32:
        x = (img.astype(jnp.float32) / div - mean) / std            # canonical form
    else:
        x = img.astype(jnp.float32) * (1.0 / (div * std)) + (-mean / std)  # kernel's affine form
    x = x.astype(operand_dtype).astype(jnp.float32)
    w = params["conv_w"].astype(operand_dtype).astype(jnp.float32)
    y = jax.lax.conv_general_dilated(
        x, w, (1, 1), "SAME", dimension_numbers=("NCHW", "OIHW", "NCHW"))
    y = jnp.maximum(y + params["conv_b"].reshape(1, -1, 1, 1), 0.0)
    pooled = y.mean(axis=(2, 3))
    return pooled @ params["fc_w"] + params["fc_b"]


if __name__ == "__main__":
    key = jax.random.PRNGKey(0)
    k_img, k_lbl, k_par = jax.random.split(key, 3)

    N, C, H, W = 2, 3, 16, 16
    num_classes = 10
    img = jax.random.uniform(k_img, (N, C, H, W), jnp.float32) * 255.0
    label = jax.random.randint(k_lbl, (N, 1), 0, num_classes, dtype=jnp.int32)
    data_dict = {"img": img, "label": label}

    normalize_cfg = dict(div_value=255.0,
                         mean=[0.485, 0.456, 0.406],
                         std=[0.229, 0.224, 0.225])
    valid_loss_dict = {"ce_loss": 1.0}
    params = init_params(k_par, in_ch=C, hidden=32, num_classes=num_classes)

    out_dict, label_dict, loss_dict = base_model_forward(
        data_dict, params, normalize_cfg, valid_loss_dict)
    out = jax.block_until_ready(out_dict["out"])

    assert out.shape == (N, num_classes)
    assert label_dict["out"].shape == (N,)

    # Tight check vs. a reference that uses the same bf16 operand rounding.
    ref_matched = _reference(img, params, normalize_cfg, operand_dtype=jnp.bfloat16)
    assert jnp.allclose(out, ref_matched, rtol=1e-3, atol=1e-3), \
        "mismatch vs precision-matched reference"
    # Loose check vs. the pure-f32 model (bounds the bf16 quantization error).
    ref_f32 = _reference(img, params, normalize_cfg)
    assert jnp.allclose(out, ref_f32, rtol=5e-2, atol=5e-2), \
        "mismatch vs f32 reference"
    print("KERNEL_OK")
</pallas_src>

<mosaic_0001>
module attributes {stable_mosaic.version = 11 : i64} {
  func.func @_fused_backbone_kernel(%arg0: i32, %arg1: memref<1x3x326xf32, #tpu.memory_space<vmem>>, %arg2: memref<1x326xf32, #tpu.memory_space<vmem>>, %arg3: memref<3x1xf32, #tpu.memory_space<vmem>>, %arg4: memref<3x1xf32, #tpu.memory_space<vmem>>, %arg5: memref<9x32x3xbf16, #tpu.memory_space<vmem>>, %arg6: memref<32x1xf32, #tpu.memory_space<vmem>>, %arg7: memref<32x128xf32, #tpu.memory_space<vmem>>, %arg8: memref<1x128xf32, #tpu.memory_space<vmem>>, %arg9: memref<1x1x128xf32, #tpu.memory_space<vmem>>) attributes {dimension_semantics = [#tpu.dimension_semantics<parallel>], iteration_bounds = array<i64: 2>, scalar_prefetch = 0 : i64, scratch_operands = 0 : i64, tpu.core_type = #tpu.core_type<tc>, window_params = [{transform_indices = @transform_0, window_bounds = array<i64: 1, 3, 326>}, {pipeline_mode = #tpu.pipeline_mode<synchronous>, transform_indices = @transform_1, window_bounds = array<i64: 1, 326>}, {pipeline_mode = #tpu.pipeline_mode<synchronous>, transform_indices = @transform_2, window_bounds = array<i64: 3, 1>}, {pipeline_mode = #tpu.pipeline_mode<synchronous>, transform_indices = @transform_3, window_bounds = array<i64: 3, 1>}, {pipeline_mode = #tpu.pipeline_mode<synchronous>, transform_indices = @transform_4, window_bounds = array<i64: 9, 32, 3>}, {pipeline_mode = #tpu.pipeline_mode<synchronous>, transform_indices = @transform_5, window_bounds = array<i64: 32, 1>}, {pipeline_mode = #tpu.pipeline_mode<synchronous>, transform_indices = @transform_6, window_bounds = array<i64: 32, 128>}, {pipeline_mode = #tpu.pipeline_mode<synchronous>, transform_indices = @transform_7, window_bounds = array<i64: 1, 128>}, {transform_indices = @transform_8, window_bounds = array<i64: 1, 1, 128>}]} {
    %c0 = arith.constant 0 : index
    %c0_0 = arith.constant 0 : index
    %c0_1 = arith.constant 0 : index
    %0 = vector.load %arg1[%c0, %c0_0, %c0_1] : memref<1x3x326xf32, #tpu.memory_space<vmem>>, vector<1x3x326xf32>
    %1 = vector.shape_cast %0 : vector<1x3x326xf32> to vector<3x326xf32>
    %c0_2 = arith.constant 0 : index
    %c0_3 = arith.constant 0 : index
    %2 = vector.load %arg2[%c0_2, %c0_3] : memref<1x326xf32, #tpu.memory_space<vmem>>, vector<1x326xf32>
    %c0_4 = arith.constant 0 : index
    %c0_5 = arith.constant 0 : index
    %3 = vector.load %arg3[%c0_4, %c0_5] : memref<3x1xf32, #tpu.memory_space<vmem>>, vector<3x1xf32>
    %4 = vector.broadcast %3 : vector<3x1xf32> to vector<3x326xf32>
    %5 = arith.mulf %1, %4 : vector<3x326xf32>
    %c0_6 = arith.constant 0 : index
    %c0_7 = arith.constant 0 : index
    %6 = vector.load %arg4[%c0_6, %c0_7] : memref<3x1xf32, #tpu.memory_space<vmem>>, vector<3x1xf32>
    %7 = vector.broadcast %6 : vector<3x1xf32> to vector<3x326xf32>
    %8 = arith.addf %5, %7 : vector<3x326xf32>
    %9 = vector.broadcast %2 : vector<1x326xf32> to vector<3x326xf32>
    %10 = arith.mulf %8, %9 : vector<3x326xf32>
    %11 = arith.truncf %10 : vector<3x326xf32> to vector<3x326xbf16>
    %c0_8 = arith.constant 0 : index
    %c0_9 = arith.constant 0 : index
    %c0_10 = arith.constant 0 : index
    %12 = vector.load %arg5[%c0_8, %c0_9, %c0_10] : memref<9x32x3xbf16, #tpu.memory_space<vmem>>, vector<1x32x3xbf16>
    %13 = vector.shape_cast %12 : vector<1x32x3xbf16> to vector<32x3xbf16>
    %14 = vector.extract_strided_slice %11 {offsets = [0, 0], sizes = [3, 288], strides = [1, 1]} : vector<3x326xbf16> to vector<3x288xbf16>
    %cst = arith.constant dense<0.000000e+00> : vector<32x288xf32>
    %15 = tpu.matmul %13, %14, %cst {dimension_numbers = #tpu.dot_dimension_numbers<[1], [0], [0], [1], [0, 0, 1, 1], [], []>} : vector<32x3xbf16>, vector<3x288xbf16>, vector<32x288xf32> -> vector<32x288xf32>
    %c1 = arith.constant 1 : index
    %c0_11 = arith.constant 0 : index
    %c0_12 = arith.constant 0 : index
    %16 = vector.load %arg5[%c1, %c0_11, %c0_12] : memref<9x32x3xbf16, #tpu.memory_space<vmem>>, vector<1x32x3xbf16>
    %17 = vector.shape_cast %16 : vector<1x32x3xbf16> to vector<32x3xbf16>
    %18 = vector.extract_strided_slice %11 {offsets = [0, 1], sizes = [3, 288], strides = [1, 1]} : vector<3x326xbf16> to vector<3x288xbf16>
    %cst_13 = arith.constant dense<0.000000e+00> : vector<32x288xf32>
    %19 = tpu.matmul %17, %18, %cst_13 {dimension_numbers = #tpu.dot_dimension_numbers<[1], [0], [0], [1], [0, 0, 1, 1], [], []>} : vector<32x3xbf16>, vector<3x288xbf16>, vector<32x288xf32> -> vector<32x288xf32>
    %20 = arith.addf %15, %19 : vector<32x288xf32>
    %c2 = arith.constant 2 : index
    %c0_14 = arith.constant 0 : index
    %c0_15 = arith.constant 0 : index
    %21 = vector.load %arg5[%c2, %c0_14, %c0_15] : memref<9x32x3xbf16, #tpu.memory_space<vmem>>, vector<1x32x3xbf16>
    %22 = vector.shape_cast %21 : vector<1x32x3xbf16> to vector<32x3xbf16>
    %23 = vector.extract_strided_slice %11 {offsets = [0, 2], sizes = [3, 288], strides = [1, 1]} : vector<3x326xbf16> to vector<3x288xbf16>
    %cst_16 = arith.constant dense<0.000000e+00> : vector<32x288xf32>
    %24 = tpu.matmul %22, %23, %cst_16 {dimension_numbers = #tpu.dot_dimension_numbers<[1], [0], [0], [1], [0, 0, 1, 1], [], []>} : vector<32x3xbf16>, vector<3x288xbf16>, vector<32x288xf32> -> vector<32x288xf32>
    %25 = arith.addf %20, %24 : vector<32x288xf32>
    %c3 = arith.constant 3 : index
    %c0_17 = arith.constant 0 : index
    %c0_18 = arith.constant 0 : index
    %26 = vector.load %arg5[%c3, %c0_17, %c0_18] : memref<9x32x3xbf16, #tpu.memory_space<vmem>>, vector<1x32x3xbf16>
    %27 = vector.shape_cast %26 : vector<1x32x3xbf16> to vector<32x3xbf16>
    %28 = vector.extract_strided_slice %11 {offsets = [0, 18], sizes = [3, 288], strides = [1, 1]} : vector<3x326xbf16> to vector<3x288xbf16>
    %cst_19 = arith.constant dense<0.000000e+00> : vector<32x288xf32>
    %29 = tpu.matmul %27, %28, %cst_19 {dimension_numbers = #tpu.dot_dimension_numbers<[1], [0], [0], [1], [0, 0, 1, 1], [], []>} : vector<32x3xbf16>, vector<3x288xbf16>, vector<32x288xf32> -> vector<32x288xf32>
    %30 = arith.addf %25, %29 : vector<32x288xf32>
    %c4 = arith.constant 4 : index
    %c0_20 = arith.constant 0 : index
    %c0_21 = arith.constant 0 : index
    %31 = vector.load %arg5[%c4, %c0_20, %c0_21] : memref<9x32x3xbf16, #tpu.memory_space<vmem>>, vector<1x32x3xbf16>
    %32 = vector.shape_cast %31 : vector<1x32x3xbf16> to vector<32x3xbf16>
    %33 = vector.extract_strided_slice %11 {offsets = [0, 19], sizes = [3, 288], strides = [1, 1]} : vector<3x326xbf16> to vector<3x288xbf16>
    %cst_22 = arith.constant dense<0.000000e+00> : vector<32x288xf32>
    %34 = tpu.matmul %32, %33, %cst_22 {dimension_numbers = #tpu.dot_dimension_numbers<[1], [0], [0], [1], [0, 0, 1, 1], [], []>} : vector<32x3xbf16>, vector<3x288xbf16>, vector<32x288xf32> -> vector<32x288xf32>
    %35 = arith.addf %30, %34 : vector<32x288xf32>
    %c5 = arith.constant 5 : index
    %c0_23 = arith.constant 0 : index
    %c0_24 = arith.constant 0 : index
    %36 = vector.load %arg5[%c5, %c0_23, %c0_24] : memref<9x32x3xbf16, #tpu.memory_space<vmem>>, vector<1x32x3xbf16>
    %37 = vector.shape_cast %36 : vector<1x32x3xbf16> to vector<32x3xbf16>
    %38 = vector.extract_strided_slice %11 {offsets = [0, 20], sizes = [3, 288], strides = [1, 1]} : vector<3x326xbf16> to vector<3x288xbf16>
    %cst_25 = arith.constant dense<0.000000e+00> : vector<32x288xf32>
    %39 = tpu.matmul %37, %38, %cst_25 {dimension_numbers = #tpu.dot_dimension_numbers<[1], [0], [0], [1], [0, 0, 1, 1], [], []>} : vector<32x3xbf16>, vector<3x288xbf16>, vector<32x288xf32> -> vector<32x288xf32>
    %40 = arith.addf %35, %39 : vector<32x288xf32>
    %c6 = arith.constant 6 : index
    %c0_26 = arith.constant 0 : index
    %c0_27 = arith.constant 0 : index
    %41 = vector.load %arg5[%c6, %c0_26, %c0_27] : memref<9x32x3xbf16, #tpu.memory_space<vmem>>, vector<1x32x3xbf16>
    %42 = vector.shape_cast %41 : vector<1x32x3xbf16> to vector<32x3xbf16>
    %43 = vector.extract_strided_slice %11 {offsets = [0, 36], sizes = [3, 288], strides = [1, 1]} : vector<3x326xbf16> to vector<3x288xbf16>
    %cst_28 = arith.constant dense<0.000000e+00> : vector<32x288xf32>
    %44 = tpu.matmul %42, %43, %cst_28 {dimension_numbers = #tpu.dot_dimension_numbers<[1], [0], [0], [1], [0, 0, 1, 1], [], []>} : vector<32x3xbf16>, vector<3x288xbf16>, vector<32x288xf32> -> vector<32x288xf32>
    %45 = arith.addf %40, %44 : vector<32x288xf32>
    %c7 = arith.constant 7 : index
    %c0_29 = arith.constant 0 : index
    %c0_30 = arith.constant 0 : index
    %46 = vector.load %arg5[%c7, %c0_29, %c0_30] : memref<9x32x3xbf16, #tpu.memory_space<vmem>>, vector<1x32x3xbf16>
    %47 = vector.shape_cast %46 : vector<1x32x3xbf16> to vector<32x3xbf16>
    %48 = vector.extract_strided_slice %11 {offsets = [0, 37], sizes = [3, 288], strides = [1, 1]} : vector<3x326xbf16> to vector<3x288xbf16>
    %cst_31 = arith.constant dense<0.000000e+00> : vector<32x288xf32>
    %49 = tpu.matmul %47, %48, %cst_31 {dimension_numbers = #tpu.dot_dimension_numbers<[1], [0], [0], [1], [0, 0, 1, 1], [], []>} : vector<32x3xbf16>, vector<3x288xbf16>, vector<32x288xf32> -> vector<32x288xf32>
    %50 = arith.addf %45, %49 : vector<32x288xf32>
    %c8 = arith.constant 8 : index
    %c0_32 = arith.constant 0 : index
    %c0_33 = arith.constant 0 : index
    %51 = vector.load %arg5[%c8, %c0_32, %c0_33] : memref<9x32x3xbf16, #tpu.memory_space<vmem>>, vector<1x32x3xbf16>
    %52 = vector.shape_cast %51 : vector<1x32x3xbf16> to vector<32x3xbf16>
    %53 = vector.extract_strided_slice %11 {offsets = [0, 38], sizes = [3, 288], strides = [1, 1]} : vector<3x326xbf16> to vector<3x288xbf16>
    %cst_34 = arith.constant dense<0.000000e+00> : vector<32x288xf32>
    %54 = tpu.matmul %52, %53, %cst_34 {dimension_numbers = #tpu.dot_dimension_numbers<[1], [0], [0], [1], [0, 0, 1, 1], [], []>} : vector<32x3xbf16>, vector<3x288xbf16>, vector<32x288xf32> -> vector<32x288xf32>
    %55 = arith.addf %50, %54 : vector<32x288xf32>
    %c0_35 = arith.constant 0 : index
    %c0_36 = arith.constant 0 : index
    %56 = vector.load %arg6[%c0_35, %c0_36] : memref<32x1xf32, #tpu.memory_space<vmem>>, vector<32x1xf32>
    %57 = vector.broadcast %56 : vector<32x1xf32> to vector<32x288xf32>
    %58 = arith.addf %55, %57 : vector<32x288xf32>
    %cst_37 = arith.constant 0.000000e+00 : f32
    %59 = vector.broadcast %cst_37 : f32 to vector<32x288xf32>
    %60 = arith.maximumf %58, %59 : vector<32x288xf32>
    %61 = vector.extract_strided_slice %2 {offsets = [0, 19], sizes = [1, 288], strides = [1, 1]} : vector<1x326xf32> to vector<1x288xf32>
    %62 = vector.broadcast %61 : vector<1x288xf32> to vector<32x288xf32>
    %63 = arith.mulf %60, %62 : vector<32x288xf32>
    %cst_38 = arith.constant dense<0.000000e+00> : vector<32xf32>
    %64 = vector.multi_reduction <add>, %63, %cst_38 [1] : vector<32x288xf32> to vector<32xf32>
    %65 = vector.shape_cast %64 : vector<32xf32> to vector<32x1xf32>
    %cst_39 = arith.constant 3.906250e-03 : f32
    %66 = vector.broadcast %cst_39 : f32 to vector<32x1xf32>
    %67 = arith.mulf %65, %66 : vector<32x1xf32>
    %c0_40 = arith.constant 0 : index
    %c0_41 = arith.constant 0 : index
    %68 = vector.load %arg7[%c0_40, %c0_41] : memref<32x128xf32, #tpu.memory_space<vmem>>, vector<32x128xf32>
    %69 = vector.broadcast %67 : vector<32x1xf32> to vector<32x128xf32>
    %70 = arith.mulf %69, %68 : vector<32x128xf32>
    %cst_42 = arith.constant dense<0.000000e+00> : vector<128xf32>
    %71 = vector.multi_reduction <add>, %70, %cst_42 [0] : vector<32x128xf32> to vector<128xf32>
    %72 = vector.shape_cast %71 : vector<128xf32> to vector<1x128xf32>
    %c0_43 = arith.constant 0 : index
    %c0_44 = arith.constant 0 : index
    %73 = vector.load %arg8[%c0_43, %c0_44] : memref<1x128xf32, #tpu.memory_space<vmem>>, vector<1x128xf32>
    %74 = arith.addf %72, %73 : vector<1x128xf32>
    %75 = vector.shape_cast %74 : vector<1x128xf32> to vector<1x1x128xf32>
    %c0_45 = arith.constant 0 : index
    %c0_46 = arith.constant 0 : index
    %c0_47 = arith.constant 0 : index
    %76 = vector.load %arg9[%c0_45, %c0_46, %c0_47] : memref<1x1x128xf32, #tpu.memory_space<vmem>>, vector<1x1x128xf32>
    tpu.vector_store %arg9[%c0_45, %c0_46, %c0_47], %75 {strides = array<i32>} : memref<1x1x128xf32, #tpu.memory_space<vmem>>, vector<1x1x128xf32>,
    return
  }
  func.func @transform_0(%arg0: i32) -> (i32, i32, i32) {
    %c0_i32 = arith.constant 0 : i32
    %c0_i32_0 = arith.constant 0 : i32
    %c0_i32_1 = arith.constant 0 : i32
    return %arg0, %c0_i32, %c0_i32_0 : i32, i32, i32
  }
  func.func @transform_1(%arg0: i32) -> (i32, i32) {
    %c0_i32 = arith.constant 0 : i32
    %c0_i32_0 = arith.constant 0 : i32
    %c0_i32_1 = arith.constant 0 : i32
    return %c0_i32, %c0_i32_0 : i32, i32
  }
  func.func @transform_2(%arg0: i32) -> (i32, i32) {
    %c0_i32 = arith.constant 0 : i32
    %c0_i32_0 = arith.constant 0 : i32
    %c0_i32_1 = arith.constant 0 : i32
    return %c0_i32, %c0_i32_0 : i32, i32
  }
  func.func @transform_3(%arg0: i32) -> (i32, i32) {
    %c0_i32 = arith.constant 0 : i32
    %c0_i32_0 = arith.constant 0 : i32
    %c0_i32_1 = arith.constant 0 : i32
    return %c0_i32, %c0_i32_0 : i32, i32
  }
  func.func @transform_4(%arg0: i32) -> (i32, i32, i32) {
    %c0_i32 = arith.constant 0 : i32
    %c0_i32_0 = arith.constant 0 : i32
    %c0_i32_1 = arith.constant 0 : i32
    %c0_i32_2 = arith.constant 0 : i32
    return %c0_i32, %c0_i32_0, %c0_i32_1 : i32, i32, i32
  }
  func.func @transform_5(%arg0: i32) -> (i32, i32) {
    %c0_i32 = arith.constant 0 : i32
    %c0_i32_0 = arith.constant 0 : i32
    %c0_i32_1 = arith.constant 0 : i32
    return %c0_i32, %c0_i32_0 : i32, i32
  }
  func.func @transform_6(%arg0: i32) -> (i32, i32) {
    %c0_i32 = arith.constant 0 : i32
    %c0_i32_0 = arith.constant 0 : i32
    %c0_i32_1 = arith.constant 0 : i32
    return %c0_i32, %c0_i32_0 : i32, i32
  }
  func.func @transform_7(%arg0: i32) -> (i32, i32) {
    %c0_i32 = arith.constant 0 : i32
    %c0_i32_0 = arith.constant 0 : i32
    %c0_i32_1 = arith.constant 0 : i32
    return %c0_i32, %c0_i32_0 : i32, i32
  }
  func.func @transform_8(%arg0: i32) -> (i32, i32, i32) {
    %c0_i32 = arith.constant 0 : i32
    %c0_i32_0 = arith.constant 0 : i32
    %c0_i32_1 = arith.constant 0 : i32
    return %arg0, %c0_i32, %c0_i32_0 : i32, i32, i32
  }
}

</mosaic_0001>

<bundles_post_ra>
// kernel: tpu_custom_call.1
= control target key start
LH: loop header
LB: loop body
LE: loop exit
PB: predicated region body
PF: predicated region fallthrough
CT: control target
= control target key end

     0   :  { %13 = vsyncpa [#allocation3], 0  ;;  %s2857_s0 = inlined_call_operand.vmem [shape: f32[2,3,326], index: 0, kind: input, shape index: {}]   ;;  %s2858_s1 = inlined_call_operand.vmem [shape: f32[1,326], index: 1, kind: input, shape index: {}]   ;;  %s2859_s2 = inlined_call_operand.vmem [shape: f32[3,1], index: 2, kind: input, shape index: {}]   ;;  %s2860_s3 = inlined_call_operand.vmem [shape: f32[3,1], index: 3, kind: input, shape index: {}]   ;;  %s2861_s4 = inlined_call_operand.vmem [shape: bf16[9,32,3], index: 4, kind: input, shape index: {}]   ;;  %s2862_s5 = inlined_call_operand.vmem [shape: f32[32,1], index: 5, kind: input, shape index: {}]   ;;  %s2863_s6 = inlined_call_operand.vmem [shape: f32[32,128], index: 6, kind: input, shape index: {}]   ;;  %s2864_s7 = inlined_call_operand.vmem [shape: f32[1,128], index: 7, kind: input, shape index: {}]   ;;  %s2865_s8 = inlined_call_operand.hbm [shape: f32[2,1,128], index: 8, kind: output, shape index: {}]  }
   0x1   :  { %15 = vsyncpa [#allocation3 + $0x1], 0  ;;  %s2262_s27 = smov 0   ;;  %s2264_s28 = smov 0  }
   0x2   :  { %s2266_s29 = smov 0   ;;  %s2268_s30 = smov 0  }
   0x3 LB: > { %s2283_s9 = sadd.s32 4294967295, %s2203_s30   ;;  %s1897_s10 = sadd.s32 4294967294, %s2203_s30   ;;  %s2203_s30 = sphi %s2268_s30, %s2915_s30   ;;  %s2199_s29 = sphi %s2266_s29, %s2914_s29   ;;  %s2195_s28 = sphi %s2264_s28, %s2913_s28   ;;  %s2191_s27 = sphi %s2262_s27, %s2912_s27  }
   0x4   : > { %s2287_s11 = sadd.s32 1, %s2203_s30   ;;  %s201_s12 = sadd.s32 1, %s2199_s29 }
   0x5   : > { %s198_s13 = ssub.s32 %s2203_s30, %s2287_s11  ;;  %p211_p0 = scmp.ne.s32.totalorder %s2199_s29, %s2195_s28 }
   0x6   : > { %p199_p1 = scmp.eq.s32.totalorder %s198_s13, 0  ;;  %p212_p2 = scmp.eq.s32.totalorder %s2283_s9, 1 }
   0x7   : > { %p217_p3 = scmp.ne.s32.totalorder %s2195_s28, %s2191_s27  ;;  %p218_p4 = scmp.eq.s32.totalorder %s1897_s10, 1 }
   0x8   : > { %s2298_s14 = scalar_select %p199_p1, %s2199_s29, %s201_s12  }
   0x9   : > { %p2300_p5 = por %p212_p2, %p211_p0  ;;  %p2304_p6 = por %p218_p4, %p217_p3 }
   0xa   : > { %p1900_p7 = scmp.ge.s32.totalorder %s2203_s30, 1  ;;  %p265_p8 = scmp.lt.s32.totalorder %s2203_s30, 3 }
   0xc   : > { %p266_p9 = pnand %p1900_p7, %p265_p8 }
   0xe   : > { %269 = sbr.rel (%p266_p9) target bundleno = 771 (0x303), region = 52 }
  0x13   : > { %v307_v0 = vld [vmem:[%s2859_s2] sm:$0x7]  ;;  %v2205_v1 = vmov 0   ;;  %p298_p10 = scmp.lt.s32.totalorder %s2283_s9, 1  ;;  %v2206_v3 = vmov 839922192   ;;  %v315_v5 = vlaneseq }
  0x14   : > { %2123 = vset.pattern.permute.xlu0 %v2205_v1  ;;  %444 = vmatprep.mubr.bf16.mxu0 %v2205_v1  ;;  %v322_v2 = vld [vmem:[%s2860_s3] sm:$0x7]  ;;  %v313_v4 = vunpack.c.l.s4 %v2206_v3  ;;  %v2330_v28 = vld [vmem:[%s2861_s4 + $0x10] sm:$0xff]   ;;  %vm392_vm0 = vcmask 23552   ;;  %s2207_s17 = smov 127   ;;  %s2208_s18 = smov 126  }
  0x15   : > { %310 = vperm.xlu0 %2123, %v307_v0   ;;  %2124 = vset.pattern.permute.xlu1 %v2205_v1  ;;  %s299_s21 = scalar_select %p298_p10, %s2283_s9, 1  ;;  %v316_v7 = vshrl.u32 %v315_v5, 7  ;;  %v306_v11 = vld [vmem:[%s2858_s1] sm:$0x7]  ;;  %v1714_v35 = vld [vmem:[%s2862_s5 + $0x10] sm:$0xff]  ;;  %v1713_v36 = vld [vmem:[%s2862_s5 + $0x8] sm:$0xff] }
  0x16   : > { %v314_v6 = vunpack.c.0.s8 %v313_v4  ;;  %2020 = vmatprep.mubr.msk.bf16.mxu1 %vm392_vm0, %v2330_v28  ;;  %s2209_s19 = smov 110   ;;  %s2210_s20 = smov 109   ;;  %v1712_v34 = vld [vmem:[%s2862_s5] sm:$0xff]  ;;  %v1715_v37 = vld [vmem:[%s2862_s5 + $0x18] sm:$0xff]  ;;  %vm399_vm1 = vcmask 1040384   ;;  %vm389_vm2 = vcmask 1039360  }
  0x17   : > { %s2072_s22 = smul.u32 12, %s299_s21  ;;  %v340_v9 = vsub.s32 0, %v316_v7  ;;  %v344_v10 = vsub.s32 1, %v316_v7  ;;  %v348_v18 = vsub.s32 2, %v316_v7  ;;  %s2211_s21 = smov 108   ;;  %vm400_vm3 = vcmask 1041408  }
  0x18   : > { %v317_v8 = vsub.s32 %v314_v6, %v316_v7  ;;  %s2213_s23 = smov 91   ;;  %s2214_s24 = smov 90   ;;  %v2215_v39 = vmov 65535   ;;  %vm662_vm4 = vcmask 1031168   ;;  %v2126_v50 = vld [vmem:[%s2861_s4 + $0x18] sm:$0xff]   ;;  %v2127_v59 = vld [vmem:[%s2861_s4] sm:$0xff]  }
  0x19   : > { %325 = vperm.xlu0 %2123, %v322_v2   ;;  %s302_s10 = scalar_lea.vmem %s2857_s0, %s2072_s22  ;;  %v341_v14 = vrot.slane %v306_v11, %v340_v9  ;;  %v345_v15 = vrot.slane %v306_v11, %v344_v10  ;;  %v349_v26 = vrot.slane %v306_v11, %v348_v18  ;;  %s2212_s22 = smov 92   ;;  %v401_v40 = vsel %vm399_vm1, 4294967295, %v2215_v39  ;;  %v2128_v0 = vld [vmem:[%s2861_s4 + $0x8] sm:$0xff]   ;;  %v2129_v3 = vld [vmem:[%s2861_s4 + $0x20] sm:$0xff]   ;;  %v2131_v18 = vld [vmem:[%s2861_s4 + $0x30] sm:$0xff]  }
  0x1a   : > { %v304_v16 = vld [vmem:[%s302_s10] sm:$0x77]  ;;  %v305_v17 = vld [vmem:[%s302_s10 + $0x8] sm:$0x7]  ;;  %v2382_v43 = vsel %vm400_vm3, %v401_v40, 0  ;;  %vm815_vm5 = vcmask 900096  }
  0x1b   : > { %v351_v23 = vcombine.low %v341_v14, %v345_v15  ;;  %vm968_vm6 = vcmask 891904   ;;  %v2130_v10 = vld [vmem:[%s2861_s4 + $0x28] sm:$0xff]   ;;  %vm1121_vm7 = vcmask 883712   ;;  %vm1274_vm8 = vcmask 752640   ;;  %s1988_s26 = sshll.u32 %s2283_s9, 4 }
  0x1c   : > { %vm1427_vm9 = vcmask 744448   ;;  %vm1580_vm10 = vcmask 736256   ;;  %vm1785_vm11 = vcmask 261120  }
  0x90   : > { %v311_v12 = vpop.permute.xlu0 %310 }
  0x91   : > { %v318_v13 = vrot.slane %v311_v12, %v317_v8 }
  0x93   : > { %v320_v20 = vmul.f32 %v318_v13, %v304_v16  ;;  %v321_v21 = vmul.f32 %v318_v13, %v305_v17 }
  0x94   : > { %v326_v19 = vpop.permute.xlu0 %325 }
  0x95   : > { %v333_v22 = vrot.slane %v326_v19, %v317_v8 }
  0x97   : > { %v335_v24 = vadd.f32 %v333_v22, %v320_v20  ;;  %v336_v25 = vadd.f32 %v333_v22, %v321_v21  ;;  %v2132_v21 = vld [vmem:[%s2861_s4 + $0x38] sm:$0xff]  }
  0x99   : > { %v353_v27 = vmul.f32 %v351_v23, %v335_v24  ;;  %v354_v29 = vmul.f32 %v349_v26, %v336_v25  ;;  %v2133_v23 = vld [vmem:[%s2861_s4 + $0x40] sm:$0xff]  }
  0x9b   : > { %v356_v30 = vcombine.high %v353_v27, %v353_v27  ;;  %v2332_v31 = vpack.c.bf16 %v353_v27, %v353_v27  ;;  %v2339_v33 = vpack.c.bf16 %v354_v29, %v354_v29 }
  0x9d   : > { %v2336_v32 = vpack.c.bf16 %v356_v30, %v356_v30  ;;  %383 = vrot.lane.b32.xlu0 %v2332_v31, %s2207_s17  ;;  %v537_v53 = vand.u32 %v2382_v43, %v2339_v33  ;;  %v531_v55 = vand.u32 %v2382_v43, %v2332_v31  ;;  %v2134_v30 = vld [vmem:[%s2861_s4 + $0x48] sm:$0xff]  }
  0x9f   : > { %385 = vrot.lane.b32.xlu1 %v2336_v32, %s2207_s17  ;;  %v534_v49 = vand.u32 %v2382_v43, %v2336_v32 }
  0xa1   : > { %660 = vrot.lane.b32.xlu0 %v2339_v33, %s2208_s18 }
  0xa3   : > { %387 = vrot.lane.b32.xlu1 %v2339_v33, %s2207_s17 }
  0xa5   : > { %811 = vrot.lane.b32.xlu0 %v2336_v32, %s2209_s19 }
  0xa7   : > { %658 = vrot.lane.b32.xlu1 %v2336_v32, %s2208_s18 }
  0xa9   : > { %809 = vrot.lane.b32.xlu0 %v2332_v31, %s2209_s19 }
  0xab   : > { %656 = vrot.lane.b32.xlu1 %v2332_v31, %s2208_s18  ;;  %s1840_s18 = scalar_lea.hbm %s2865_s8, %s1988_s26 }
  0xad   : > { %966 = vrot.lane.b32.xlu0 %v2339_v33, %s2210_s20 }
  0xaf   : > { %813 = vrot.lane.b32.xlu1 %v2339_v33, %s2209_s19 }
  0xb1   : > { %1117 = vrot.lane.b32.xlu0 %v2336_v32, %s2211_s21 }
  0xb3   : > { %964 = vrot.lane.b32.xlu1 %v2336_v32, %s2210_s20 }
  0xb5   : > { %1115 = vrot.lane.b32.xlu0 %v2332_v31, %s2211_s21 }
  0xb7   : > { %962 = vrot.lane.b32.xlu1 %v2332_v31, %s2210_s20 }
  0xb9   : > { %1272 = vrot.lane.b32.xlu0 %v2339_v33, %s2212_s22 }
  0xbb   : > { %1119 = vrot.lane.b32.xlu1 %v2339_v33, %s2211_s21  ;;  %s2216_s21 = smov [#allocation2]  }
  0xbd   : > { %1423 = vrot.lane.b32.xlu0 %v2336_v32, %s2213_s23 }
  0xbf   : > { %1270 = vrot.lane.b32.xlu1 %v2336_v32, %s2212_s22 }
  0xc1   : > { %1421 = vrot.lane.b32.xlu0 %v2332_v31, %s2213_s23 }
  0xc3   : > { %1268 = vrot.lane.b32.xlu1 %v2332_v31, %s2212_s22  ;;  %s2147_s22 = sshll.u32 %s2216_s21, 4  ;;  %s2148_s22 = int_to_ptr.vmem [resolvable:$false] %s2147_s22 }
  0xc4   : > { %s2149_s9 = scalar_lea.vmem %s2148_s22, 32 }
  0xc5   : > { %1578 = vrot.lane.b32.xlu0 %v2339_v33, %s2214_s24 }
  0xc7   : > { %1425 = vrot.lane.b32.xlu1 %v2339_v33, %s2213_s23  ;;  %s296_s23 = sand.u32 1, %s2195_s28  }
  0xc8   : > { %s297_s10 = scalar_lea.vmem [#allocation2], %s296_s23  ;;  %s1830_s19 = scalar_lea.sflag [#allocation3], %s296_s23 }
  0xc9   : > { %1718 = vperm.xlu0 %2123, %v1712_v34   ;;  %s1842_s12 = sshll.u32 %s297_s10, 4  ;;  %s1843_s12 = int_to_ptr.vmem [resolvable:$true] %s1842_s12 }
  0xca   : > { %p2150_p0 = scmp.lt.s32.totalorder %s1843_s12, %s2148_s22 }
  0xcb   : > { %1576 = vrot.lane.b32.xlu1 %v2336_v32, %s2214_s24 }
  0xcd   : > { %1728 = vperm.xlu0 %2123, %v1714_v35  }
  0xcf   : > { %1574 = vrot.lane.b32.xlu1 %v2332_v31, %s2214_s24 }
  0xd1   : > { %1760 = vrot.lane.b32.xlu0 %v341_v14, %s2210_s20 }
  0xd3   : > { %1723 = vperm.xlu1 %2124, %v1713_v36  }
  0xd5   : > { %1764 = vrot.lane.b32.xlu0 %v349_v26, %s2210_s20 }
  0xd7   : > { %1733 = vperm.xlu1 %2124, %v1715_v37  }
  0xdb   : > { %1762 = vrot.lane.b32.xlu1 %v345_v15, %s2210_s20  ;;  %s2143_s20 = scalar_lea.vmem %s1843_s12, 16 }
  0xdc   : > { %p2144_p11 = scmp.ne.s32.totalorder %s1843_s12, %s2143_s20  ;;  %p2151_p1 = scmp.lt.s32.totalorder %s2149_s9, %s2143_s20 }
  0xde   : > { %p2145_p12 = pnand %p2144_p11, %p2300_p5  ;;  %p2152_p2 = por %p2151_p1, %p2150_p0 }
  0xe0   : > { %p2146_p13 = pneg %p2145_p12 }
  0xe2   : > { %p2153_p3 = pnand %p2152_p2, %p2146_p13 }
 0x10f   : > { %v384_v41 = vpop.permute.xlu0 %383 }
 0x111   : > { %v386_v38 = vpop.permute.xlu1 %385 }
 0x112   : > { %v390_v42 = vsel %vm389_vm2, %v384_v41, %v386_v38  ;;  %v2136_v41 = vld [vmem:[%s2861_s4 + $0x58] sm:$0xff]  }
 0x113   : > { %v404_v48 = vand.u32 %v2382_v43, %v390_v42  ;;  %v661_v51 = vpop.permute.xlu0 %660 }
 0x114   : > { %v678_v56 = vand.u32 %v661_v51, %v2382_v43 }
 0x115   : > { %v388_v44 = vpop.permute.xlu1 %387 }
 0x116   : > { %v410_v45 = vand.u32 %v2382_v43, %v388_v44  ;;  %v391_v46 = vsel %vm389_vm2, %v386_v38, %v388_v44  ;;  %v2135_v38 = vld [vmem:[%s2861_s4 + $0x50] sm:$0xff]   ;;  %v2137_v44 = vld [vmem:[%s2861_s4 + $0x60] sm:$0xff]  }
 0x117   : > { %v407_v47 = vand.u32 %v2382_v43, %v391_v46  ;;  %v812_v60 = vpop.permute.xlu0 %811 }
 0x118   : > { %2018 = vmatprep.subr.bf16.mxu1 %v410_v45 }
 0x119   : > { %426 = vmatprep.subr.bf16.mxu0 %v407_v47  ;;  %2019 = vmatpush3.bf16.msra.mxu1 %v410_v45  ;;  %v659_v52 = vpop.permute.xlu1 %658 }
 0x11a   : > { %v664_v54 = vsel %vm662_vm4, %v659_v52, %v661_v51  ;;  %427 = vmatpush1.bf16.msra.mxu0 %v404_v48  ;;  %553 = vmatprep.subr.bf16.mxu1 %v534_v49 }
 0x11b   : > { %2024 = vmatprep.subr.bf16.mxu0 %v537_v53  ;;  %v675_v57 = vand.u32 %v664_v54, %v2382_v43  ;;  %v810_v5 = vpop.permute.xlu0 %809 }
 0x11c   : > { %2021 = vmatmul.mubr.msk.bf16.vlgmr.msra.gmra.mxu1 %vm392_vm0, %v2126_v50  ;;  %v816_v8 = vsel %vm815_vm5, %v810_v5, %v812_v60 }
 0x11d   : > { %1908 = vmatmul.mubr.msk.bf16.vlgmr.msra.gmra.mxu0 %vm392_vm0, %v2330_v28  ;;  %v657_v58 = vpop.permute.xlu1 %656  ;;  %554 = vmatpush1.bf16.msra.mxu1 %v531_v55  ;;  %v825_v13 = vand.u32 %v816_v8, %v2382_v43 }
 0x11e   : > { %2025 = vmatpush3.bf16.msra.mxu0 %v537_v53  ;;  %2030 = vmatprep.subr.bf16.mxu1 %v678_v56  ;;  %v663_v2 = vsel %vm662_vm4, %v657_v58, %v659_v52  ;;  %v2140_v58 = vld [vmem:[%s2861_s4 + $0x78] sm:$0xff]  }
 0x11f   : > { %694 = vmatprep.subr.bf16.mxu0 %v675_v57  ;;  %571 = vmatprep.mubr.bf16.mxu1 %v2205_v1  ;;  %v672_v6 = vand.u32 %v663_v2, %v2382_v43  ;;  %v967_v11 = vpop.permute.xlu0 %966 }
 0x120   : > { %454 = vmatprep.mubr.bf16.mxu0 %v2205_v1  ;;  %v984_v14 = vand.u32 %v967_v11, %v2382_v43 }
 0x121   : > { %v814_v61 = vpop.permute.xlu1 %813 }
 0x122   : > { %v817_v62 = vsel %vm815_vm5, %v812_v60, %v814_v61  ;;  %v831_v7 = vand.u32 %v814_v61, %v2382_v43  ;;  %v2141_v60 = vld [vmem:[%s2861_s4 + $0x80] sm:$0xff]  }
 0x123   : > { %v828_v63 = vand.u32 %v817_v62, %v2382_v43  ;;  %v1118_v17 = vpop.permute.xlu0 %1117  ;;  %v2142_v62 = vld [vmem:[%s2861_s4 + $0x88] sm:$0xff]  }
 0x124   : > { %1914 = vmatmul.mubr.msk.bf16.vlgmr.msra.gmra.mxu1 %vm392_vm0, %v2127_v59 }
 0x125   : > { %2031 = vmatpush3.bf16.msra.mxu1 %v678_v56  ;;  %1909 = vmatmul.mubr.msk.bf16.gmra.mxu0 %vm392_vm0, %v2126_v50  ;;  %v965_v4 = vpop.permute.xlu1 %964  ;;  %v2138_v50 = vld [vmem:[%s2861_s4 + $0x68] sm:$0xff]   ;;  %v2139_v56 = vld [vmem:[%s2861_s4 + $0x70] sm:$0xff]  }
 0x126   : > { %847 = vmatprep.subr.bf16.mxu1 %v828_v63  ;;  %581 = vmatprep.mubr.bf16.mxu1 %v2205_v1  ;;  %v970_v12 = vsel %vm968_vm6, %v965_v4, %v967_v11 }
 0x127   : > { %2026 = vmatprep.mubr.msk.bf16.mxu0 %vm392_vm0, %v2127_v59  ;;  %v981_v15 = vand.u32 %v970_v12, %v2382_v43  ;;  %v1116_v25 = vpop.permute.xlu0 %1115 }
 0x128   : > { %v1122_v28 = vsel %vm1121_vm7, %v1116_v25, %v1118_v17 }
 0x129   : > { %v963_v9 = vpop.permute.xlu1 %962  ;;  %v1131_v33 = vand.u32 %v1122_v28, %v2382_v43 }
 0x12a   : > { %v969_v22 = vsel %vm968_vm6, %v963_v9, %v965_v4 }
 0x12b   : > { %v978_v26 = vand.u32 %v969_v22, %v2382_v43  ;;  %v1273_v31 = vpop.permute.xlu0 %1272 }
 0x12c   : > { %1915 = vmatmul.mubr.msk.bf16.gmra.mxu1 %vm392_vm0, %v2128_v0  ;;  %v1290_v34 = vand.u32 %v1273_v31, %v2382_v43 }
 0x12d   : > { %2027 = vmatmul.mubr.msk.bf16.vlgmr.msra.gmra.mxu0 %vm392_vm0, %v2128_v0  ;;  %2032 = vmatprep.mubr.msk.bf16.mxu1 %vm392_vm0, %v2129_v3  ;;  %v1120_v16 = vpop.permute.xlu1 %1119 }
 0x12e   : > { %695 = vmatpush1.bf16.msra.mxu0 %v672_v6  ;;  %712 = vmatprep.mubr.bf16.mxu0 %v2205_v1  ;;  %v1123_v19 = vsel %vm1121_vm7, %v1118_v17, %v1120_v16  ;;  %v1137_v27 = vand.u32 %v1120_v16, %v2382_v43 }
 0x12f   : > { %2036 = vmatprep.subr.bf16.mxu0 %v831_v7  ;;  %v1134_v20 = vand.u32 %v1123_v19, %v2382_v43  ;;  %v1424_v37 = vpop.permute.xlu0 %1423 }
 0x131   : > { %v1271_v24 = vpop.permute.xlu1 %1270 }
 0x132   : > { %v1276_v32 = vsel %vm1274_vm8, %v1271_v24, %v1273_v31 }
 0x133   : > { %v1287_v35 = vand.u32 %v1276_v32, %v2382_v43  ;;  %v1422_v45 = vpop.permute.xlu0 %1421 }
 0x134   : > { %2033 = vmatmul.mubr.msk.bf16.vlgmr.msra.gmra.mxu1 %vm392_vm0, %v2130_v10  ;;  %v1428_v49 = vsel %vm1427_vm9, %v1422_v45, %v1424_v37 }
 0x135   : > { %848 = vmatpush1.bf16.msra.mxu1 %v825_v13  ;;  %1924 = vmatmul.mubr.msk.bf16.vlgmr.msra.gmra.mxu0 %vm392_vm0, %v2129_v3  ;;  %v1269_v29 = vpop.permute.xlu1 %1268  ;;  %v1437_v53 = vand.u32 %v1428_v49, %v2382_v43 }
 0x136   : > { %2037 = vmatpush3.bf16.msra.mxu0 %v831_v7  ;;  %2042 = vmatprep.subr.bf16.mxu1 %v984_v14  ;;  %v1275_v42 = vsel %vm1274_vm8, %v1269_v29, %v1271_v24 }
 0x137   : > { %1000 = vmatprep.subr.bf16.mxu0 %v981_v15  ;;  %865 = vmatprep.mubr.bf16.mxu1 %v2205_v1  ;;  %v1284_v46 = vand.u32 %v1275_v42, %v2382_v43  ;;  %v1579_v51 = vpop.permute.xlu0 %1578 }
 0x138   : > { %722 = vmatprep.mubr.bf16.mxu0 %v2205_v1  ;;  %v1596_v54 = vand.u32 %v1579_v51, %v2382_v43 }
 0x139   : > { %v1426_v36 = vpop.permute.xlu1 %1425 }
 0x13a   : > { %v1429_v39 = vsel %vm1427_vm9, %v1424_v37, %v1426_v36  ;;  %v1443_v47 = vand.u32 %v1426_v36, %v2382_v43 }
 0x13b   : > { %v1440_v40 = vand.u32 %v1429_v39, %v2382_v43 }
 0x13c   : > { %1934 = vmatmul.mubr.msk.bf16.vlgmr.msra.gmra.mxu1 %vm392_vm0, %v2131_v18 }
 0x13d   : > { %2043 = vmatpush3.bf16.msra.mxu1 %v984_v14  ;;  %1925 = vmatmul.mubr.msk.bf16.gmra.mxu0 %vm392_vm0, %v2130_v10  ;;  %v1577_v48 = vpop.permute.xlu1 %1576 }
 0x13e   : > { %1153 = vmatprep.subr.bf16.mxu1 %v1134_v20  ;;  %875 = vmatprep.mubr.bf16.mxu1 %v2205_v1  ;;  %v1582_v52 = vsel %vm1580_vm10, %v1577_v48, %v1579_v51 }
 0x13f   : > { %2038 = vmatprep.mubr.msk.bf16.mxu0 %vm392_vm0, %v2131_v18  ;;  %v1593_v55 = vand.u32 %v1582_v52, %v2382_v43 }
 0x141   : > { %v1575_v57 = vpop.permute.xlu1 %1574 }
 0x142   : > { %v1581_v59 = vsel %vm1580_vm10, %v1575_v57, %v1577_v48 }
 0x143   : > { %v1590_v61 = vand.u32 %v1581_v59, %v2382_v43 }
 0x144   : > { %1935 = vmatmul.mubr.msk.bf16.gmra.mxu1 %vm392_vm0, %v2132_v21 }
 0x145   : > { %2039 = vmatmul.mubr.msk.bf16.vlgmr.msra.gmra.mxu0 %vm392_vm0, %v2132_v21  ;;  %2044 = vmatprep.mubr.msk.bf16.mxu1 %vm392_vm0, %v2133_v23 }
 0x146   : > { %1001 = vmatpush1.bf16.msra.mxu0 %v978_v26  ;;  %1018 = vmatprep.mubr.bf16.mxu0 %v2205_v1 }
 0x147   : > { %2048 = vmatprep.subr.bf16.mxu0 %v1137_v27 }
 0x14c   : > { %2045 = vmatmul.mubr.msk.bf16.vlgmr.msra.gmra.mxu1 %vm392_vm0, %v2134_v30 }
 0x14d   : > { %1154 = vmatpush1.bf16.msra.mxu1 %v1131_v33  ;;  %1944 = vmatmul.mubr.msk.bf16.vlgmr.msra.gmra.mxu0 %vm392_vm0, %v2133_v23 }
 0x14e   : > { %2049 = vmatpush3.bf16.msra.mxu0 %v1137_v27  ;;  %2054 = vmatprep.subr.bf16.mxu1 %v1290_v34 }
 0x14f   : > { %1306 = vmatprep.subr.bf16.mxu0 %v1287_v35  ;;  %1171 = vmatprep.mubr.bf16.mxu1 %v2205_v1 }
 0x150   : > { %1028 = vmatprep.mubr.bf16.mxu0 %v2205_v1 }
 0x154   : > { %1954 = vmatmul.mubr.msk.bf16.vlgmr.msra.gmra.mxu1 %vm392_vm0, %v2135_v38 }
 0x155   : > { %2055 = vmatpush3.bf16.msra.mxu1 %v1290_v34  ;;  %1945 = vmatmul.mubr.msk.bf16.gmra.mxu0 %vm392_vm0, %v2134_v30 }
 0x156   : > { %1459 = vmatprep.subr.bf16.mxu1 %v1440_v40  ;;  %1181 = vmatprep.mubr.bf16.mxu1 %v2205_v1 }
 0x157   : > { %2050 = vmatprep.mubr.msk.bf16.mxu0 %vm392_vm0, %v2135_v38 }
 0x15c   : > { %1955 = vmatmul.mubr.msk.bf16.gmra.mxu1 %vm392_vm0, %v2136_v41 }
 0x15d   : > { %2051 = vmatmul.mubr.msk.bf16.vlgmr.msra.gmra.mxu0 %vm392_vm0, %v2136_v41  ;;  %2056 = vmatprep.mubr.msk.bf16.mxu1 %vm392_vm0, %v2137_v44 }
 0x15e   : > { %1307 = vmatpush1.bf16.msra.mxu0 %v1284_v46  ;;  %1324 = vmatprep.mubr.bf16.mxu0 %v2205_v1 }
 0x15f   : > { %2060 = vmatprep.subr.bf16.mxu0 %v1443_v47 }
 0x164   : > { %2057 = vmatmul.mubr.msk.bf16.vlgmr.msra.gmra.mxu1 %vm392_vm0, %v2138_v50 }
 0x165   : > { %1460 = vmatpush1.bf16.msra.mxu1 %v1437_v53  ;;  %1964 = vmatmul.mubr.msk.bf16.vlgmr.msra.gmra.mxu0 %vm392_vm0, %v2137_v44 }
 0x166   : > { %2061 = vmatpush3.bf16.msra.mxu0 %v1443_v47  ;;  %2066 = vmatprep.subr.bf16.mxu1 %v1596_v54 }
 0x167   : > { %1612 = vmatprep.subr.bf16.mxu0 %v1593_v55  ;;  %1477 = vmatprep.mubr.bf16.mxu1 %v2205_v1 }
 0x168   : > { %1334 = vmatprep.mubr.bf16.mxu0 %v2205_v1 }
 0x16c   : > { %1974 = vmatmul.mubr.msk.bf16.vlgmr.msra.gmra.mxu1 %vm392_vm0, %v2139_v56 }
 0x16d   : > { %2067 = vmatpush3.bf16.msra.mxu1 %v1596_v54  ;;  %1965 = vmatmul.mubr.msk.bf16.gmra.mxu0 %vm392_vm0, %v2138_v50 }
 0x16e   : > { %1487 = vmatprep.mubr.bf16.mxu1 %v2205_v1  ;;  %2062 = vmatprep.mubr.msk.bf16.mxu0 %vm392_vm0, %v2139_v56 }
 0x174   : > { %1975 = vmatmul.mubr.msk.bf16.gmra.mxu1 %vm392_vm0, %v2140_v58 }
 0x175   : > { %2063 = vmatmul.mubr.msk.bf16.vlgmr.msra.gmra.mxu0 %vm392_vm0, %v2140_v58  ;;  %2068 = vmatprep.mubr.msk.bf16.mxu1 %vm392_vm0, %v2141_v60 }
 0x176   : > { %1613 = vmatpush1.bf16.msra.mxu0 %v1590_v61  ;;  %1630 = vmatprep.mubr.bf16.mxu0 %v2205_v1 }
 0x17c   : > { %2069 = vmatmul.mubr.msk.bf16.vlgmr.msra.gmra.mxu1 %vm392_vm0, %v2142_v62 }
 0x17d   : > { %1984 = vmatmul.mubr.msk.bf16.vlgmr.msra.gmra.mxu0 %vm392_vm0, %v2141_v60 }
 0x17e   : > { %1640 = vmatprep.mubr.bf16.mxu0 %v2205_v1 }
 0x185   : > { %1985 = vmatmul.mubr.msk.bf16.gmra.mxu0 %vm392_vm0, %v2142_v62 }
 0x1dc   : > { %v2022_v43 = vpop.f32.mrf.mxu1 }
 0x1dd   : > { %v446_v63 = vpop.f32.mrf.mxu0 }
 0x1de   : > { %v499_v0 = vpop.f32.mrf.mxu1 }
 0x1df   : > { %v448_v2 = vpop.f32.mrf.mxu0 }
 0x1e0   : > { %v2023_v3 = vpop.f32.mrf.mxu1 }
 0x1e1   : > { %v450_v4 = vpop.f32.mrf.mxu0 }
 0x1e2   : > { %v502_v5 = vpop.f32.mrf.mxu1 }
 0x1e3   : > { %v452_v6 = vpop.f32.mrf.mxu0 }
 0x1e4   : > { %v573_v7 = vpop.f32.mrf.mxu1 }
 0x1e5   : > { %v2532_v8 = vadd.f32 %v573_v7, %v446_v63  ;;  %v456_v9 = vpop.f32.mrf.mxu0 }
 0x1e6   : > { %v575_v10 = vpop.f32.mrf.mxu1 }
 0x1e7   : > { %v2534_v11 = vadd.f32 %v575_v10, %v448_v2  ;;  %v458_v12 = vpop.f32.mrf.mxu0 }
 0x1e8   : > { %v577_v13 = vpop.f32.mrf.mxu1 }
 0x1e9   : > { %v2536_v1 = vadd.f32 %v577_v13, %v450_v4  ;;  %v460_v14 = vpop.f32.mrf.mxu0 }
 0x1ea   : > { %v579_v15 = vpop.f32.mrf.mxu1 }
 0x1eb   : > { %v2538_v16 = vadd.f32 %v579_v15, %v452_v6  ;;  %v462_v17 = vpop.f32.mrf.mxu0 }
 0x1ec   : > { %v583_v18 = vpop.f32.mrf.mxu1 }
 0x1ed   : > { %v2540_v19 = vadd.f32 %v583_v18, %v456_v9  ;;  %v2028_v20 = vpop.f32.mrf.mxu0 }
 0x1ee   : > { %v635_v21 = vadd.f32 %v2028_v20, %v2022_v43  ;;  %v585_v22 = vpop.f32.mrf.mxu1  ;;  %v2638_v20 = vpop.permute.xlu0 %1718 }
 0x1ef   : > { %v2542_v23 = vadd.f32 %v585_v22, %v458_v12  ;;  %v626_v24 = vpop.f32.mrf.mxu0  ;;  %2874 = vst [vmem:[#allocation7_spill] sm:$0xff] %v2638_v20 }
 0x1f0   : > { %v2544_v25 = vadd.f32 %v626_v24, %v499_v0  ;;  %v587_v26 = vpop.f32.mrf.mxu1 }
 0x1f1   : > { %v2546_v27 = vadd.f32 %v587_v26, %v460_v14  ;;  %v2029_v28 = vpop.f32.mrf.mxu0  ;;  %v2646_v26 = vpop.permute.xlu1 %1723 }
 0x1f2   : > { %v638_v29 = vadd.f32 %v2029_v28, %v2023_v3  ;;  %v589_v30 = vpop.f32.mrf.mxu1  ;;  %2877 = vst [vmem:[#allocation10_spill] sm:$0xff] %v2646_v26 }
 0x1f3   : > { %v2548_v31 = vadd.f32 %v589_v30, %v462_v17  ;;  %v629_v32 = vpop.f32.mrf.mxu0 }
 0x1f4   : > { %v2550_v33 = vadd.f32 %v629_v32, %v502_v5  ;;  %v2034_v34 = vpop.f32.mrf.mxu1  ;;  %v2654_v32 = vpop.permute.xlu0 %1728 }
 0x1f5   : > { %v2552_v35 = vadd.f32 %v2034_v34, %v635_v21  ;;  %v2554_v36 = vpop.f32.mrf.mxu0  ;;  %2881 = vst [vmem:[#allocation14_spill] sm:$0xff] %v2654_v32 }
 0x1f6   : > { %v2556_v37 = vpop.f32.mrf.mxu1 }
 0x1f7   : > { %v2558_v38 = vpop.f32.mrf.mxu0 }
 0x1f8   : > { %v2035_v39 = vpop.f32.mrf.mxu1  ;;  %v1761_v26 = vpop.permute.xlu0 %1760 }
 0x1f9   : > { %v2560_v40 = vadd.f32 %v2035_v39, %v638_v29  ;;  %v2562_v41 = vpop.f32.mrf.mxu0 }
 0x1fa   : > { %v2564_v42 = vpop.f32.mrf.mxu1 }
 0x1fb   : > { %v2566_v44 = vpop.f32.mrf.mxu0 }
 0x1fc   : > { %v2568_v45 = vpop.f32.mrf.mxu1 }
 0x1fd   : > { %v2570_v46 = vpop.f32.mrf.mxu0 }
 0x1fe   : > { %v2572_v47 = vpop.f32.mrf.mxu1 }
 0x1ff   : > { %v2574_v48 = vpop.f32.mrf.mxu0 }
 0x200   : > { %v2576_v49 = vpop.f32.mrf.mxu1 }
 0x201   : > { %v2578_v50 = vpop.f32.mrf.mxu0 }
 0x202   : > { %v2580_v51 = vpop.f32.mrf.mxu1 }
 0x203   : > { %v2582_v52 = vpop.f32.mrf.mxu0 }
 0x204   : > { %v2584_v53 = vpop.f32.mrf.mxu1 }
 0x205   : > { %v2586_v54 = vpop.f32.mrf.mxu0 }
 0x206   : > { %v2588_v55 = vpop.f32.mrf.mxu1 }
 0x207   : > { %v2590_v56 = vpop.f32.mrf.mxu0 }
 0x208   : > { %v2592_v57 = vpop.f32.mrf.mxu1 }
 0x209   : > { %v2594_v58 = vpop.f32.mrf.mxu0 }
 0x20a   : > { %v2596_v59 = vpop.f32.mrf.mxu1 }
 0x20b   : > { %v2598_v60 = vpop.f32.mrf.mxu0 }
 0x20c   : > { %v2600_v61 = vpop.f32.mrf.mxu1 }
 0x20d   : > { %v2602_v62 = vpop.f32.mrf.mxu0 }
 0x20e   : > { %v2604_v43 = vpop.f32.mrf.mxu1 }
 0x20f   : > { %v2606_v63 = vpop.f32.mrf.mxu0 }
 0x210   : > { %v2608_v0 = vpop.f32.mrf.mxu1 }
 0x211   : > { %v2610_v2 = vpop.f32.mrf.mxu0 }
 0x212   : > { %v2612_v3 = vpop.f32.mrf.mxu1 }
 0x213   : > { %v2614_v4 = vpop.f32.mrf.mxu0 }
 0x214   : > { %v2616_v5 = vpop.f32.mrf.mxu1 }
 0x215   : > { %v2618_v6 = vpop.f32.mrf.mxu0 }
 0x216   : > { %v2620_v7 = vpop.f32.mrf.mxu1 }
 0x217   : > { %v2622_v9 = vpop.f32.mrf.mxu0 }
 0x218   : > { %v2624_v10 = vpop.f32.mrf.mxu1 }
 0x219   : > { %v2626_v12 = vpop.f32.mrf.mxu0 }
 0x21a   : > { %v2628_v13 = vpop.f32.mrf.mxu1 }
 0x21b   : > { %v2630_v14 = vpop.f32.mrf.mxu0 }
 0x21c   : > { %v2632_v15 = vpop.f32.mrf.mxu1 }
 0x21d   : > { %v2634_v17 = vpop.f32.mrf.mxu0 }
 0x21e   : > { %2872 = vst [vmem:[#allocation5_spill] sm:$0xff] %v2634_v17  ;;  %v2636_v18 = vpop.f32.mrf.mxu1 }
 0x21f   : > { %2873 = vst [vmem:[#allocation6_spill] sm:$0xff] %v2636_v18  ;;  %v2640_v21 = vpop.f32.mrf.mxu0  ;;  %v2662_v18 = vpop.permute.xlu1 %1733 }
 0x220   : > { %v2642_v22 = vpop.f32.mrf.mxu1  ;;  %2885 = vst [vmem:[#allocation18_spill] sm:$0xff] %v2662_v18  ;;  %v782_v18 = vadd.f32 %v2554_v36, %v2532_v8  ;;  %v787_v8 = vadd.f32 %v2564_v42, %v2550_v33  ;;  %v791_v33 = vadd.f32 %v2578_v50, %v2546_v27 }
 0x221   : > { %2875 = vst [vmem:[#allocation8_spill] sm:$0xff] %v2642_v22  ;;  %v2644_v24 = vpop.f32.mrf.mxu0 }
 0x222   : > { %2876 = vst [vmem:[#allocation9_spill] sm:$0xff] %v2644_v24  ;;  %v2648_v28 = vpop.f32.mrf.mxu1  ;;  %v944_v27 = vadd.f32 %v2592_v57, %v791_v33 }
 0x223   : > { %2878 = vst [vmem:[#allocation11_spill] sm:$0xff] %v2648_v28  ;;  %v2650_v29 = vpop.f32.mrf.mxu0 }
 0x224   : > { %2879 = vst [vmem:[#allocation12_spill] sm:$0xff] %v2650_v29  ;;  %v2652_v30 = vpop.f32.mrf.mxu1 }
 0x225   : > { %2880 = vst [vmem:[#allocation13_spill] sm:$0xff] %v2652_v30  ;;  %v2656_v34 = vpop.f32.mrf.mxu0 }
 0x226   : > { %2882 = vst [vmem:[#allocation15_spill] sm:$0xff] %v2656_v34  ;;  %v2658_v39 = vpop.f32.mrf.mxu1  ;;  %v1763_v34 = vpop.permute.xlu1 %1762 }
 0x227   : > { %2883 = vst [vmem:[#allocation16_spill] sm:$0xff] %v2658_v39  ;;  %v2660_v20 = vpop.f32.mrf.mxu0 }
 0x228   : > { %2884 = vst [vmem:[#allocation17_spill] sm:$0xff] %v2660_v20  ;;  %v2664_v22 = vpop.f32.mrf.mxu1  ;;  %v2680_v20 = vpop.permute.xlu0 %1764 }
 0x229   : > { %v2666_v24 = vpop.f32.mrf.mxu0 }
 0x22a   : > { %2886 = vst [vmem:[#allocation19_spill] sm:$0xff] %v2666_v24  ;;  %v2668_v28 = vpop.f32.mrf.mxu1  ;;  %v783_v24 = vadd.f32 %v2558_v38, %v2534_v11  ;;  %v786_v11 = vadd.f32 %v2566_v44, %v2538_v16  ;;  %v935_v38 = vadd.f32 %v2568_v45, %v782_v18  ;;  %v943_v44 = vadd.f32 %v2586_v54, %v2552_v35 }
 0x22b   : > { %2887 = vst [vmem:[#allocation20_spill] sm:$0xff] %v2668_v28  ;;  %v2670_v29 = vpop.f32.mrf.mxu0 }
 0x22c   : > { %2888 = vst [vmem:[#allocation21_spill] sm:$0xff] %v2670_v29  ;;  %v2672_v30 = vpop.f32.mrf.mxu1  ;;  %v2689_v29 = vsel %vm968_vm6, %v1761_v26, %v1763_v34  ;;  %v788_v26 = vadd.f32 %v2570_v46, %v2540_v19  ;;  %v939_v16 = vadd.f32 %v2580_v51, %v786_v11  ;;  %v1096_v50 = vadd.f32 %v2600_v61, %v943_v44  ;;  %v2896_v11 = vld [vmem:[#allocation9_spill] sm:$0xff] }
 0x22d   : > { %v2674_v32 = vpop.f32.mrf.mxu0  ;;  %v1088_v35 = vadd.f32 %v2602_v62, %v935_v38 }
 0x22e   : > { %2889 = vst [vmem:[#allocation22_spill] sm:$0xff] %v2674_v32  ;;  %v2676_v17 = vpop.f32.mrf.mxu1  ;;  %v2693_v32 = vsel %vm968_vm6, %v1763_v34, %v2680_v20  ;;  %v936_v34 = vadd.f32 %v2572_v47, %v783_v24  ;;  %v941_v19 = vadd.f32 %v2584_v53, %v788_v26  ;;  %v946_v47 = vadd.f32 %v2594_v58, %v2560_v40  ;;  %v2894_v24 = vld [vmem:[#allocation6_spill] sm:$0xff]  ;;  %v2897_v38 = vld [vmem:[#allocation16_spill] sm:$0xff] }
 0x22f   : > { %2890 = vst [vmem:[#allocation23_spill] sm:$0xff] %v2676_v17  ;;  %v2678_v39 = vpop.f32.mrf.mxu0  ;;  %v785_v17 = vadd.f32 %v2562_v41, %v2536_v1  ;;  %v792_v41 = vadd.f32 %v2582_v52, %v2548_v31  ;;  %v1241_v58 = vadd.f32 %v2616_v5, %v1088_v35 }
 0x230   : > { %2891 = vst [vmem:[#allocation24_spill] sm:$0xff] %v2678_v39  ;;  %v2686_v28 = vpop.f32.mrf.mxu1  ;;  %v784_v39 = vadd.f32 %v2556_v37, %v2544_v25  ;;  %v789_v25 = vadd.f32 %v2574_v48, %v2542_v23  ;;  %v940_v48 = vadd.f32 %v2598_v60, %v787_v8  ;;  %v1089_v52 = vadd.f32 %v2606_v63, %v936_v34  ;;  %v2895_v8 = vld [vmem:[#allocation8_spill] sm:$0xff] }
 0x231   : > { %v2703_v36 = vpop.f32.mrf.mxu0  ;;  %v938_v1 = vadd.f32 %v2576_v49, %v785_v17  ;;  %v945_v31 = vadd.f32 %v2596_v59, %v792_v41  ;;  %v1099_v54 = vadd.f32 %v2608_v0, %v946_v47  ;;  %v1094_v59 = vadd.f32 %v2618_v6, %v941_v19  ;;  %v2892_v6 = vld [vmem:[#allocation5_spill] sm:$0xff] }
 0x232   : > { %v2711_v37 = vpop.f32.mrf.mxu1  ;;  %v942_v23 = vadd.f32 %v2588_v55, %v789_v25  ;;  %v937_v45 = vadd.f32 %v2590_v56, %v784_v39  ;;  %v1093_v40 = vadd.f32 %v2612_v3, %v940_v48  ;;  %v1092_v56 = vadd.f32 %v2614_v4, %v939_v16  ;;  %v2899_v25 = vld [vmem:[#allocation12_spill] sm:$0xff]  ;;  %v2901_v41 = vld [vmem:[#allocation13_spill] sm:$0xff] }
 0x233   : > { %v2719_v42 = vpop.f32.mrf.mxu0  ;;  %v1091_v55 = vadd.f32 %v2610_v2, %v938_v1  ;;  %v1242_v60 = vadd.f32 %v2620_v7, %v1089_v52  ;;  %v1097_v63 = vadd.f32 %v2626_v12, %v944_v27  ;;  %v1098_v4 = vadd.f32 %v2630_v14, %v945_v31  ;;  %v2893_v7 = vld [vmem:[#allocation15_spill] sm:$0xff]  ;;  %v2900_v1 = vld [vmem:[#allocation17_spill] sm:$0xff]  ;;  %v2903_v31 = vld [vmem:[#allocation20_spill] sm:$0xff] }
 0x234   : > { %v2726_v46 = vpop.f32.mrf.mxu1  ;;  %v1090_v51 = vadd.f32 %v2604_v43, %v937_v45  ;;  %v1095_v61 = vadd.f32 %v2622_v9, %v942_v23  ;;  %v1245_v0 = vadd.f32 %v2628_v13, %v1092_v56  ;;  %v1247_v5 = vadd.f32 %v2632_v15, %v1094_v59  ;;  %v2902_v23 = vld [vmem:[#allocation19_spill] sm:$0xff] }
 0x235   : > { %v2064_v49 = vpop.f32.mrf.mxu0  ;;  %v1244_v43 = vadd.f32 %v2624_v10, %v1091_v55  ;;  %v1249_v17 = vadd.f32 %v2892_v6, %v1096_v50  ;;  %v1394_v18 = vadd.f32 %v2893_v7, %v1241_v58  ;;  %v1250_v10 = vadd.f32 %v2895_v8, %v1097_v63  ;;  %v2904_v50 = vld [vmem:[#allocation21_spill] sm:$0xff] }
 0x236   : > { %v2737_v53 = vpop.f32.mrf.mxu1  ;;  %v1243_v2 = vadd.f32 %v2640_v21, %v1090_v51  ;;  %v1248_v39 = vadd.f32 %v2894_v24, %v1095_v61  ;;  %v1252_v12 = vadd.f32 %v2896_v11, %v1099_v54  ;;  %v2898_v21 = vld [vmem:[#allocation11_spill] sm:$0xff]  ;;  %v1246_v14 = vadd.f32 %v2899_v25, %v1093_v40  ;;  %v2906_v40 = vld [vmem:[#allocation22_spill] sm:$0xff] }
 0x237   : > { %v1532_v57 = vpop.f32.mrf.mxu0  ;;  %v1251_v34 = vadd.f32 %v2898_v21, %v1098_v4  ;;  %v1395_v15 = vadd.f32 %v2900_v1, %v1242_v60  ;;  %v1547_v33 = vadd.f32 %v2672_v30, %v1394_v18  ;;  %v1402_v19 = vadd.f32 %v2901_v41, %v1249_v17  ;;  %v2905_v51 = vld [vmem:[#allocation23_spill] sm:$0xff]  ;;  %v2907_v30 = vld [vmem:[#allocation24_spill] sm:$0xff]  ;;  %v2910_v25 = vld [vmem:[#allocation14_spill] sm:$0xff] }
 0x238   : > { %v2747_v62 = vpop.f32.mrf.mxu1  ;;  %v1396_v13 = vadd.f32 %v2897_v38, %v1243_v2  ;;  %v1405_v44 = vadd.f32 %v2664_v22, %v1252_v12  ;;  %v1397_v45 = vadd.f32 %v2902_v23, %v1244_v43  ;;  %v1399_v48 = vadd.f32 %v2903_v31, %v1246_v14  ;;  %v2908_v43 = vld [vmem:[#allocation7_spill] sm:$0xff] }
 0x239   : > { %v2065_v3 = vpop.f32.mrf.mxu0  ;;  %v1398_v35 = vadd.f32 %v2904_v50, %v1245_v0  ;;  %v1548_v52 = vadd.f32 %v2905_v51, %v1395_v15  ;;  %v1400_v56 = vadd.f32 %v2906_v40, %v1247_v5  ;;  %v1401_v58 = vadd.f32 %v2907_v30, %v1248_v39  ;;  %v2911_v50 = vld [vmem:[#allocation18_spill] sm:$0xff] }
 0x23a   : > { %v1495_v9 = vpop.f32.mrf.mxu1  ;;  %v1549_v27 = vadd.f32 %v1532_v57, %v1396_v13  ;;  %v1555_v59 = vadd.f32 %v2064_v49, %v1402_v19  ;;  %v1550_v22 = vadd.f32 %v2686_v28, %v1397_v45  ;;  %v1403_v57 = vadd.f32 %v2703_v36, %v1250_v10  ;;  %v2909_v13 = vld [vmem:[#allocation10_spill] sm:$0xff] }
 0x23b   : > { %v1535_v26 = vpop.f32.mrf.mxu0  ;;  %v1551_v0 = vadd.f32 %v2711_v37, %v1398_v35  ;;  %v1404_v49 = vadd.f32 %v2719_v42, %v1251_v34  ;;  %v1553_v36 = vadd.f32 %v2726_v46, %v1400_v56  ;;  %v1558_v8 = vadd.f32 %v2065_v3, %v1405_v44 }
 0x23c   : > { %v2070_v16 = vpop.f32.mrf.mxu1  ;;  %v1552_v6 = vadd.f32 %v1535_v26, %v1399_v48  ;;  %v1554_v37 = vadd.f32 %v2737_v53, %v1401_v58  ;;  %v1556_v53 = vadd.f32 %v2747_v62, %v1403_v57 }
 0x23d   : > { %v1632_v47 = vpop.f32.mrf.mxu0  ;;  %v1708_v17 = vadd.f32 %v2070_v16, %v1555_v59  ;;  %v1557_v41 = vadd.f32 %v1495_v9, %v1404_v49 }
 0x23e   : > { %v1700_v54 = vadd.f32 %v1632_v47, %v1547_v33  ;;  %v1685_v55 = vpop.f32.mrf.mxu1 }
 0x23f   : > { %v1702_v60 = vadd.f32 %v1685_v55, %v1549_v27  ;;  %v1634_v61 = vpop.f32.mrf.mxu0  ;;  %v1744_v14 = vadd.f32 %v2910_v25, %v1708_v17 }
 0x240   : > { %v1736_v63 = vadd.f32 %v2908_v43, %v1700_v54  ;;  %v1701_v2 = vadd.f32 %v1634_v61, %v1548_v52  ;;  %v2071_v4 = vpop.f32.mrf.mxu1 }
 0x241   : > { %v1738_v5 = vadd.f32 %v2908_v43, %v1702_v60  ;;  %v1636_v7 = vpop.f32.mrf.mxu0  ;;  %v1711_v42 = vadd.f32 %v2071_v4, %v1558_v8  ;;  %v1756_v48 = vmax.f32 %v1744_v14, 0.0 }
 0x242   : > { %v1748_v18 = vmax.f32 %v1736_v63, 0.0  ;;  %v1737_v24 = vadd.f32 %v2908_v43, %v1701_v2  ;;  %v1703_v28 = vadd.f32 %v1636_v7, %v1550_v22  ;;  %v1688_v39 = vpop.f32.mrf.mxu1 }
 0x243   : > { %v1750_v10 = vmax.f32 %v1738_v5, 0.0  ;;  %v1705_v11 = vadd.f32 %v1688_v39, %v1552_v6  ;;  %v1638_v12 = vpop.f32.mrf.mxu0  ;;  %v1747_v35 = vadd.f32 %v2911_v50, %v1711_v42  ;;  %v1780_v63 = vmul.f32 %v2680_v20, %v1756_v48  ;;  %v1812_v42 = vld [vmem:[%s2863_s6 + $0x18] sm:$0xff] }
 0x244   : > { %v1749_v38 = vmax.f32 %v1737_v24, 0.0  ;;  %v1739_v26 = vadd.f32 %v2909_v13, %v1703_v28  ;;  %v1704_v21 = vadd.f32 %v1638_v12, %v1551_v0  ;;  %v1772_v33 = vmul.f32 %v2689_v29, %v1748_v18 }
 0x245   : > { %v1741_v34 = vadd.f32 %v2909_v13, %v1705_v11  ;;  %v1642_v1 = vpop.f32.mrf.mxu0  ;;  %v1774_v15 = vmul.f32 %v2680_v20, %v1750_v10  ;;  %v1759_v22 = vmax.f32 %v1747_v35, 0.0  ;;  %v1796_v49 = vsel %vm1785_vm11, %v1780_v63, 0.0 }
 0x246   : > { %v1740_v46 = vadd.f32 %v2909_v13, %v1704_v21  ;;  %v1706_v3 = vadd.f32 %v1642_v1, %v1553_v36  ;;  %v1773_v16 = vmul.f32 %v2693_v32, %v1749_v38  ;;  %v1751_v19 = vmax.f32 %v1739_v26, 0.0 }
 0x247   : > { %v1753_v44 = vmax.f32 %v1741_v34, 0.0  ;;  %v1644_v23 = vpop.f32.mrf.mxu0  ;;  %v1786_v52 = vsel %vm1785_vm11, %v1774_v15, 0.0  ;;  %v1783_v18 = vmul.f32 %v2680_v20, %v1759_v22 }
 0x248   : > { %v1752_v45 = vmax.f32 %v1740_v46, 0.0  ;;  %v1742_v27 = vadd.f32 %v2910_v25, %v1706_v3  ;;  %v1707_v47 = vadd.f32 %v1644_v23, %v1554_v37  ;;  %v1784_v31 = vadd.f32 %v1773_v16, %v1772_v33  ;;  %v1810_v37 = vld [vmem:[%s2863_s6 + $0x8] sm:$0xff]  ;;  %v1826_v23 = vld [vmem:[%s2864_s7] sm:$0x1] }
 0x249   : > { %v1646_v51 = vpop.f32.mrf.mxu0  ;;  %v1777_v54 = vmul.f32 %v2680_v20, %v1753_v44  ;;  %v1775_v58 = vmul.f32 %v2689_v29, %v1751_v19  ;;  %v1801_v8 = vsel %vm1785_vm11, %v1783_v18, 0.0  ;;  %v1809_v20 = vld [vmem:[%s2863_s6] sm:$0xff] }
 0x24a   : > { %v1776_v55 = vmul.f32 %v2693_v32, %v1752_v45  ;;  %v1754_v62 = vmax.f32 %v1742_v27, 0.0  ;;  %v1743_v9 = vadd.f32 %v2910_v25, %v1707_v47  ;;  %v1709_v40 = vadd.f32 %v1646_v51, %v1556_v53 }
 0x24b   : > { %v1648_v56 = vpop.f32.mrf.mxu0  ;;  %v1787_v30 = vadd.f32 %v1786_v52, %v1784_v31  ;;  %v1791_v43 = vsel %vm1785_vm11, %v1777_v54, 0.0 }
 0x24c   : > { %v1755_v59 = vmax.f32 %v1743_v9, 0.0  ;;  %v1745_v60 = vadd.f32 %v2911_v50, %v1709_v40  ;;  %v1710_v61 = vadd.f32 %v1648_v56, %v1557_v41  ;;  %v1790_v57 = vadd.f32 %v1776_v55, %v1775_v58 }
 0x24d   : > { %1788 = vadd.xlane.f32.xlu1 %v1787_v30  ;;  %v1778_v2 = vmul.f32 %v2689_v29, %v1754_v62 }
 0x24e   : > { %v1779_v4 = vmul.f32 %v2693_v32, %v1755_v59  ;;  %v1757_v0 = vmax.f32 %v1745_v60, 0.0  ;;  %v1746_v6 = vadd.f32 %v2911_v50, %v1710_v61  ;;  %v1792_v17 = vadd.f32 %v1791_v43, %v1790_v57 }
 0x250   : > { %v1758_v5 = vmax.f32 %v1746_v6, 0.0  ;;  %v1795_v7 = vadd.f32 %v1779_v4, %v1778_v2  ;;  %1793 = vadd.xlane.f32.xlu0 %v1792_v17  ;;  %v1781_v24 = vmul.f32 %v2689_v29, %v1757_v0 }
 0x252   : > { %v1782_v28 = vmul.f32 %v2693_v32, %v1758_v5  ;;  %v1797_v39 = vadd.f32 %v1796_v49, %v1795_v7  ;;  %v1811_v32 = vld [vmem:[%s2863_s6 + $0x10] sm:$0xff] }
 0x254   : > { %v1800_v36 = vadd.f32 %v1782_v28, %v1781_v24  ;;  %1798 = vadd.xlane.f32.xlu0 %v1797_v39 }
 0x256   : > { %v1802_v10 = vadd.f32 %v1801_v8, %v1800_v36 }
 0x258   : > { %1803 = vadd.xlane.f32.xlu1 %v1802_v10 }
 0x2d6   : > { %v1789_v11 = vpop.xlane.xlu1 %1788 }
 0x2d7   : > { %v1805_v13 = vmul.f32 0.00390625, %v1789_v11 }
 0x2d9   : > { %v1794_v12 = vpop.xlane.xlu0 %1793  ;;  %v1813_v25 = vmul.f32 %v1809_v20, %v1805_v13 }
 0x2da   : > { %v1806_v38 = vmul.f32 0.00390625, %v1794_v12 }
 0x2dc   : > { %v1814_v29 = vmul.f32 %v1810_v37, %v1806_v38 }
 0x2dd   : > { %v1799_v26 = vpop.xlane.xlu0 %1798 }
 0x2de   : > { %v1807_v21 = vmul.f32 0.00390625, %v1799_v26  ;;  %v1817_v1 = vadd.f32 %v1814_v29, %v1813_v25 }
 0x2e0   : > { %v1815_v14 = vmul.f32 %v1811_v32, %v1807_v21 }
 0x2e1   : > { %v1804_v34 = vpop.xlane.xlu1 %1803 }
 0x2e2   : > { %v1808_v15 = vmul.f32 0.00390625, %v1804_v34  ;;  %v1818_v46 = vadd.f32 %v1817_v1, %v1815_v14 }
 0x2e4   : > { %v1816_v3 = vmul.f32 %v1812_v42, %v1808_v15 }
 0x2e6   : > { %v1819_v33 = vadd.f32 %v1818_v46, %v1816_v3 }
 0x2e8   : > { %v1820_v16 = vrot.slane %v1819_v33, 4 }
 0x2ea   : > { %v1821_v53 = vadd.f32 %v1820_v16, %v1819_v33 }
 0x2ec   : > { %v1822_v41 = vrot.slane %v1821_v53, 2 }
 0x2ee   : > { %v1823_v19 = vadd.f32 %v1822_v41, %v1821_v53 }
 0x2f0   : > { %v1824_v44 = vrot.slane %v1823_v19, 1 }
 0x2f2   : > { %v1825_v45 = vadd.f32 %v1824_v44, %v1823_v19 }
 0x2f4   : > { %v1827_v27 = vadd.f32 %v1826_v23, %v1825_v45 }
 0x2f6   : > { %1828 = vst [vmem:[%s297_s10] sm:$0x1] %v1827_v27 }
 0x2f7   : > { %2156 = shalt.err (!%p2153_p3)
}
 0x2f8   : > { %s2157_s24 = scalar_lea.hbm %s1840_s18, 16  ;;  %s2161_s26 = scalar_lea.hbm %s2865_s8, 32 }
 0x2f9   : > { %p2158_p4 = scmp.ne.s32.totalorder %s1840_s18, %s2157_s24  ;;  %p2162_p9 = scmp.lt.s32.totalorder %s1840_s18, %s2865_s8 }
 0x2fa   : > { %p2163_p10 = scmp.lt.s32.totalorder %s2161_s26, %s2157_s24 }
 0x2fb   : > { %p2159_p7 = pnand %p2158_p4, %p2300_p5 }
 0x2fc   : > { %p2164_p11 = por %p2163_p10, %p2162_p9 }
 0x2fd   : > { %p2160_p8 = pneg %p2159_p7 }
 0x2ff   : > { %p2165_p12 = pnand %p2164_p11, %p2160_p8 }
 0x301   : > { %2168 = shalt.err (!%p2165_p12)
}
 0x302   : > { %2073 = dma.vmem_to_hbm [thread:$0]  (%p2300_p5), %s1843_s12, 16, %s1840_s18, %s1830_s19  }
 0x303 PF: > { %p2079_p13 = scmp.ge.s32.totalorder %s2203_s30, 2  ;;  %s1854_s17 = sand.u32 1, %s2191_s27  }
 0x304   : > { %s1855_s20 = scalar_lea.sflag [#allocation3], %s1854_s17 }
 0x305   : > { %p2076_p0 = pnand %p2079_p13, %p2304_p6 }
 0x307   : > { %p2077_p1 = pneg %p2076_p0 }
 0x309   : > { %2186 = dma.done.wait (%p2077_p1), %s1855_s20, 16  }
 0x30a   : > { %2188 = vsyncadd (%p2077_p1), %s1855_s20, 4294967280  ;;  %p18_p2 = scmp.ge.s32.totalorder %s2287_s11, 4   ;;  %s2912_s27 = smov %s2195_s28 }
 0x30b   : > { %s2913_s28 = smov %s2199_s29  ;;  %s2914_s29 = smov %s2298_s14 }
 0x30c   : > { %s2915_s30 = smov %s2287_s11  ;;  %20 = sbr.rel (!%p18_p2) target bundleno = 3 (0x3), region = 95 }
 0x311   :  { %1859 = vsyncpa [#allocation3], 1 }
 0x312   :  { %1861 = vsyncpa [#allocation3 + $0x1], 1 }

</bundles_post_ra>
